<compile_context>
chip_gen: v7x
topology: tpu7x:2x2x1
jax: 0.10.0
libtpu: 0.0.40
codegen_flags: <defaults>
</compile_context>

<pallas_src>
import jax
import jax.numpy as jnp
from jax.experimental import pallas as pl
from jax.experimental.pallas import tpu as pltpu

IN_F, HID, OUT_F = 4, 10, 2


def estimation_kernel(xT_ref, w1t_ref, b1_ref, w2d_ref, b2d_ref, p1_ref):
    # xT_ref:  (4, TM)   feature-major input tile (batch on lanes)
    # w1t_ref: (10, 4)   W1^T (VMEM-resident)
    # b1_ref:  (10, 1)   b1 as a column (lane-broadcast)
    # w2d_ref: (10, 1)   w2[:, 1] - w2[:, 0] as a column
    # b2d_ref: (1, 1)    b2[1] - b2[0]
    # p1_ref:  (1, TM)   P(class 1) -- lane-dense output
    xT = xT_ref[...]

    # Linear(4,10) + Tanh, feature-major:  h = tanh(W1^T x^T + b1)  -> (10, TM)
    h = jnp.tanh(
        jnp.dot(w1t_ref[...], xT, preferred_element_type=jnp.float32) + b1_ref[...]
    )

    # Dropout(p=0.5) -> identity (eval mode)

    # Linear(10,2) + Softmax collapsed into sigmoid of the logit difference:
    #   softmax([l0, l1])[1] = sigmoid(l1 - l0) = 0.5 * (1 + tanh(0.5 * d))
    # Tiny GEMV on the VPU: broadcast-FMA + sublane reduce (no MXU/exp/divide).
    d = jnp.sum(h * w2d_ref[...], axis=0, keepdims=True) + b2d_ref[...]  # (1, TM)
    p1_ref[...] = 0.5 * (1.0 + jnp.tanh(0.5 * d))


def _round_up(a, b):
    return ((a + b - 1) // b) * b


def estimation_forward(x, w1, b1, w2, b2, *, tm=8192):
    """x: (N, 4) f32. w1: (4,10), b1: (10,), w2: (10,2), b2: (2,). -> (N, 2)."""
    n = x.shape[0]

    # Batch lives on the lane axis inside the kernel -> pad it to a lane multiple.
    n128 = max(128, _round_up(n, 128))
    # Keep >= ~4 grid steps when the batch allows it (v7x megacore sharding);
    # for small batches fall back to a single full tile.
    tm_cap = max(128, _round_up(pl.cdiv(n128, 4), 128))
    tm = min(tm, tm_cap)
    n_pad = _round_up(n128, tm)

    # Feature-major input (4, n_pad): one cheap XLA pad + transpose.
    xT = jnp.pad(x, ((0, n_pad - n), (0, 0))).T

    w1t = w1.T                                      # (10, 4)
    b1c = b1.reshape(HID, 1)                        # (10, 1)
    w2d = (w2[:, 1] - w2[:, 0]).reshape(HID, 1)     # (10, 1)
    b2d = (b2[1] - b2[0]).reshape(1, 1)             # (1, 1)

    p1 = pl.pallas_call(
        estimation_kernel,
        out_shape=jax.ShapeDtypeStruct((1, n_pad), jnp.float32),
        grid=(n_pad // tm,),
        in_specs=[
            pl.BlockSpec((IN_F, tm), lambda i: (0, i)),    # batch-tiled, lane-dense
            pl.BlockSpec((HID, IN_F), lambda i: (0, 0)),   # resident weights / biases
            pl.BlockSpec((HID, 1), lambda i: (0, 0)),
            pl.BlockSpec((HID, 1), lambda i: (0, 0)),
            pl.BlockSpec((1, 1), lambda i: (0, 0)),
        ],
        out_specs=pl.BlockSpec((1, tm), lambda i: (0, i)),
        compiler_params=pltpu.CompilerParams(
            dimension_semantics=("parallel",),
            vmem_limit_bytes=32 * 1024 * 1024,
        ),
    )(xT, w1t, b1c, w2d, b2d)

    p1 = p1[0, :n]
    # Reconstruct both softmax probabilities outside the kernel.
    return jnp.stack([1.0 - p1, p1], axis=-1)


def init_params(key):
    """Deterministic init mimicking PyTorch Linear default (U(-1/sqrt(fan_in), ...))."""
    k1, k2, k3, k4 = jax.random.split(key, 4)
    lim1 = 1.0 / jnp.sqrt(jnp.float32(IN_F))
    lim2 = 1.0 / jnp.sqrt(jnp.float32(HID))
    w1 = jax.random.uniform(k1, (IN_F, HID), jnp.float32, -lim1, lim1)
    b1 = jax.random.uniform(k2, (HID,), jnp.float32, -lim1, lim1)
    w2 = jax.random.uniform(k3, (HID, OUT_F), jnp.float32, -lim2, lim2)
    b2 = jax.random.uniform(k4, (OUT_F,), jnp.float32, -lim2, lim2)
    return w1, b1, w2, b2


def reference_forward(x, w1, b1, w2, b2):
    h = jnp.tanh(x @ w1 + b1)
    logits = h @ w2 + b2
    return jax.nn.softmax(logits, axis=-1)


if __name__ == "__main__":
    key = jax.random.PRNGKey(0)
    kx, kp = jax.random.split(key)

    batch = 2
    x = jax.random.normal(kx, (batch, IN_F), jnp.float32)
    w1, b1, w2, b2 = init_params(kp)

    out = estimation_forward(x, w1, b1, w2, b2)
    out = jax.block_until_ready(out)

    ref = reference_forward(x, w1, b1, w2, b2)
    assert out.shape == (batch, OUT_F)
    assert jnp.allclose(out, ref, atol=1e-5, rtol=1e-5), (out, ref)
    assert jnp.allclose(jnp.sum(out, axis=-1), 1.0, atol=1e-5)

    print("KERNEL_OK")
</pallas_src>

<mosaic_0001>
module attributes {stable_mosaic.version = 11 : i64} {
  func.func @estimation_kernel(%arg0: i32, %arg1: memref<4x128xf32, #tpu.memory_space<vmem>>, %arg2: memref<10x4xf32, #tpu.memory_space<vmem>>, %arg3: memref<10x1xf32, #tpu.memory_space<vmem>>, %arg4: memref<10x1xf32, #tpu.memory_space<vmem>>, %arg5: memref<1x1xf32, #tpu.memory_space<vmem>>, %arg6: memref<1x128xf32, #tpu.memory_space<vmem>>) attributes {dimension_semantics = [#tpu.dimension_semantics<parallel>], iteration_bounds = array<i64: 1>, scalar_prefetch = 0 : i64, scratch_operands = 0 : i64, tpu.core_type = #tpu.core_type<tc>, window_params = [{transform_indices = @transform_0, window_bounds = array<i64: 4, 128>}, {pipeline_mode = #tpu.pipeline_mode<synchronous>, transform_indices = @transform_1, window_bounds = array<i64: 10, 4>}, {pipeline_mode = #tpu.pipeline_mode<synchronous>, transform_indices = @transform_2, window_bounds = array<i64: 10, 1>}, {pipeline_mode = #tpu.pipeline_mode<synchronous>, transform_indices = @transform_3, window_bounds = array<i64: 10, 1>}, {pipeline_mode = #tpu.pipeline_mode<synchronous>, transform_indices = @transform_4, window_bounds = array<i64: 1, 1>}, {transform_indices = @transform_5, window_bounds = array<i64: 1, 128>}]} {
    %c0 = arith.constant 0 : index
    %c0_0 = arith.constant 0 : index
    %0 = vector.load %arg1[%c0, %c0_0] : memref<4x128xf32, #tpu.memory_space<vmem>>, vector<4x128xf32>
    %c0_1 = arith.constant 0 : index
    %c0_2 = arith.constant 0 : index
    %1 = vector.load %arg2[%c0_1, %c0_2] : memref<10x4xf32, #tpu.memory_space<vmem>>, vector<10x4xf32>
    %cst = arith.constant dense<0.000000e+00> : vector<10x128xf32>
    %2 = tpu.matmul %1, %0, %cst {dimension_numbers = #tpu.dot_dimension_numbers<[1], [0], [0], [1], [0, 0, 1, 1], [], []>} : vector<10x4xf32>, vector<4x128xf32>, vector<10x128xf32> -> vector<10x128xf32>
    %c0_3 = arith.constant 0 : index
    %c0_4 = arith.constant 0 : index
    %3 = vector.load %arg3[%c0_3, %c0_4] : memref<10x1xf32, #tpu.memory_space<vmem>>, vector<10x1xf32>
    %4 = vector.broadcast %3 : vector<10x1xf32> to vector<10x128xf32>
    %5 = arith.addf %2, %4 : vector<10x128xf32>
    %6 = math.tanh %5 : vector<10x128xf32>
    %c0_5 = arith.constant 0 : index
    %c0_6 = arith.constant 0 : index
    %7 = vector.load %arg4[%c0_5, %c0_6] : memref<10x1xf32, #tpu.memory_space<vmem>>, vector<10x1xf32>
    %8 = vector.broadcast %7 : vector<10x1xf32> to vector<10x128xf32>
    %9 = arith.mulf %6, %8 : vector<10x128xf32>
    %cst_7 = arith.constant dense<0.000000e+00> : vector<128xf32>
    %10 = vector.multi_reduction <add>, %9, %cst_7 [0] : vector<10x128xf32> to vector<128xf32>
    %11 = vector.shape_cast %10 : vector<128xf32> to vector<1x128xf32>
    %c0_8 = arith.constant 0 : index
    %c0_9 = arith.constant 0 : index
    %12 = vector.load %arg5[%c0_8, %c0_9] : memref<1x1xf32, #tpu.memory_space<vmem>>, vector<1x1xf32>
    %13 = vector.broadcast %12 : vector<1x1xf32> to vector<1x128xf32>
    %14 = arith.addf %11, %13 : vector<1x128xf32>
    %cst_10 = arith.constant 5.000000e-01 : f32
    %15 = vector.broadcast %cst_10 : f32 to vector<1x128xf32>
    %16 = arith.mulf %15, %14 : vector<1x128xf32>
    %17 = math.tanh %16 : vector<1x128xf32>
    %cst_11 = arith.constant 1.000000e+00 : f32
    %18 = vector.broadcast %cst_11 : f32 to vector<1x128xf32>
    %19 = arith.addf %18, %17 : vector<1x128xf32>
    %cst_12 = arith.constant 5.000000e-01 : f32
    %20 = vector.broadcast %cst_12 : f32 to vector<1x128xf32>
    %21 = arith.mulf %20, %19 : vector<1x128xf32>
    %c0_13 = arith.constant 0 : index
    %c0_14 = arith.constant 0 : index
    %22 = vector.load %arg6[%c0_13, %c0_14] : memref<1x128xf32, #tpu.memory_space<vmem>>, vector<1x128xf32>
    tpu.vector_store %arg6[%c0_13, %c0_14], %21 {strides = array<i32>} : memref<1x128xf32, #tpu.memory_space<vmem>>, vector<1x128xf32>,
    return
  }
  func.func @transform_0(%arg0: i32) -> (i32, i32) {
    %c0_i32 = arith.constant 0 : i32
    %c0_i32_0 = arith.constant 0 : i32
    return %c0_i32, %arg0 : i32, i32
  }
  func.func @transform_1(%arg0: i32) -> (i32, i32) {
    %c0_i32 = arith.constant 0 : i32
    %c0_i32_0 = arith.constant 0 : i32
    %c0_i32_1 = arith.constant 0 : i32
    return %c0_i32, %c0_i32_0 : i32, i32
  }
  func.func @transform_2(%arg0: i32) -> (i32, i32) {
    %c0_i32 = arith.constant 0 : i32
    %c0_i32_0 = arith.constant 0 : i32
    %c0_i32_1 = arith.constant 0 : i32
    return %c0_i32, %c0_i32_0 : i32, i32
  }
  func.func @transform_3(%arg0: i32) -> (i32, i32) {
    %c0_i32 = arith.constant 0 : i32
    %c0_i32_0 = arith.constant 0 : i32
    %c0_i32_1 = arith.constant 0 : i32
    return %c0_i32, %c0_i32_0 : i32, i32
  }
  func.func @transform_4(%arg0: i32) -> (i32, i32) {
    %c0_i32 = arith.constant 0 : i32
    %c0_i32_0 = arith.constant 0 : i32
    %c0_i32_1 = arith.constant 0 : i32
    return %c0_i32, %c0_i32_0 : i32, i32
  }
  func.func @transform_5(%arg0: i32) -> (i32, i32) {
    %c0_i32 = arith.constant 0 : i32
    %c0_i32_0 = arith.constant 0 : i32
    return %c0_i32, %arg0 : i32, i32
  }
}

</mosaic_0001>

<bundles_post_ra>
// kernel: tpu_custom_call.1
= control target key start
LH: loop header
LB: loop body
LE: loop exit
PB: predicated region body
PF: predicated region fallthrough
CT: control target
= control target key end

     0   :  { %s292_s0 = inlined_call_operand.vmem [shape: f32[4,128], index: 0, kind: input, shape index: {}]   ;;  %s293_s1 = inlined_call_operand.vmem [shape: f32[10,4], index: 1, kind: input, shape index: {}]   ;;  %s294_s2 = inlined_call_operand.vmem [shape: f32[10,1], index: 2, kind: input, shape index: {}]   ;;  %s295_s3 = inlined_call_operand.vmem [shape: f32[10,1], index: 3, kind: input, shape index: {}]   ;;  %s296_s4 = inlined_call_operand.<no memory space> [shape: f32[1,1], index: 4, kind: input, shape index: {}]   ;;  %s297_s5 = inlined_call_operand.hbm [shape: f32[1,128], index: 5, kind: output, shape index: {}]  }
   0x1   :  { %v10_v0 = vstv %s296_s4 }
   0x2   :  { %11 = vst [vmem:[#allocation2] sm:$0x1] %v10_v0 }
   0x3   :  { %v23_v1 = vld [vmem:[%s292_s0] sm:$0xf]  ;;  %vm45_vm0 = vcmask 1043456   ;;  %vm38_vm1 = vcmask 31744   ;;  %v25_v3 = vld [vmem:[%s293_s1 + $0x8] sm:$0x3] }
   0x4   :  { %v24_v2 = vld [vmem:[%s293_s1] sm:$0xff]  ;;  %185 = vmatprep.subr.msk.mxu0 %vm45_vm0, %v23_v1  ;;  %v27_v4 = vld [vmem:[%s294_s2 + $0x8] sm:$0x3]  ;;  %v224_v5 = vmov 0  }
   0x5   :  { %187 = vmatprep.mubr.msk.f32.mxu0 %vm38_vm1, %v24_v2  ;;  %186 = vmatpush3.msk.msra.mxu0 %vm45_vm0, %v23_v1  ;;  %v127_v6 = vld [vmem:[%s295_s3 + $0x8] sm:$0x3] }
   0x6   :  { %192 = vset.pattern.permute.xlu0 %v224_v5  ;;  %188 = vmatmul.mubr.msk.f32.vlgmr.msra.gmra.mrb[0].mxu0 %vm38_vm1, %v25_v3 }
   0x7   :  { %35 = vperm.xlu0 %192, %v27_v4  }
   0x8   :  { %12 = vsyncpa [#allocation4], 0  ;;  %v26_v7 = vld [vmem:[%s294_s2] sm:$0xff]  ;;  %193 = vset.pattern.permute.xlu1 %v224_v5  ;;  %vm140_vm2 = vcmask 1041408   ;;  %v155_v23 = vlaneseq  ;;  %s225_s2 = smov [#allocation3]  }
   0x9   :  { %135 = vperm.xlu1 %193, %v127_v6   ;;  %v126_v8 = vld [vmem:[%s295_s3] sm:$0xff]  ;;  %s171_s3 = sshll.u32 %s225_s2, 4  ;;  %s172_s3 = int_to_ptr.vmem [resolvable:$true] %s171_s3 }
   0xa   :  { %v149_v9 = vld [vmem:[#allocation2] sm:$0x1]  ;;  %v156_v26 = vshrl.u32 %v155_v23, 7  ;;  %s200_s6 = scalar_lea.vmem %s172_s3, 16  ;;  %s204_s7 = scalar_lea.vmem %s172_s3, 32 }
   0xb   :  { %30 = vperm.xlu0 %192, %v26_v7   ;;  %p201_p0 = scmp.ne.s32.totalorder %s172_s3, %s200_s6  ;;  %p205_p1 = scmp.lt.s32.totalorder %s172_s3, %s172_s3 }
   0xc   :  { %v157_v29 = vsub.s32 0, %v156_v26  ;;  %p206_p2 = scmp.lt.s32.totalorder %s204_s7, %s200_s6 }
   0xd   :  { %130 = vperm.xlu1 %193, %v126_v8  }
   0xe   :  { %p207_p3 = por %p206_p2, %p205_p1 }
   0xf   :  { %152 = vperm.xlu0 %192, %v149_v9  }
  0x10   :  { %p208_p4 = pnand %p207_p3, %p201_p0 }
  0x86   :  { %v36_v10 = vpop.permute.xlu0 %35 }
  0x88   :  { %v136_v16 = vpop.permute.xlu1 %135 }
  0x8a   :  { %v31_v12 = vpop.permute.xlu0 %30 }
  0x8c   :  { %v131_v20 = vpop.permute.xlu1 %130 }
  0x8e   :  { %v153_v31 = vpop.permute.xlu0 %152 }
  0x8f   :  { %v158_v33 = vrot.slane %v153_v31, %v157_v29 }
  0xd9   :  { %v189_v11 = vpop.f32.mrb[0].mxu0 }
  0xda   :  { %v121_v13 = vadd.f32 %v189_v11, %v36_v10  ;;  %v115_v14 = vpop.f32.mrb[1].mxu0 }
  0xdb   :  { %v116_v15 = vadd.f32 %v115_v14, %v31_v12 }
  0xdc   :  { %194 = vtanh.f32 %v121_v13 }
  0xdd   :  { %196 = vtanh.f32 %v116_v15 }
  0xe6   :  { %v195_v17 = vpop.eup %194 }
  0xe7   :  { %v197_v18 = vpop.eup %196  ;;  %v139_v19 = vmul.f32 %v195_v17, %v136_v16 }
  0xe8   :  { %v138_v21 = vmul.f32 %v197_v18, %v131_v20 }
  0xe9   :  { %v141_v22 = vsel %vm140_vm2, %v139_v19, 0.0 }
  0xea   :  { %v142_v24 = vadd.f32 %v141_v22, %v138_v21 }
  0xec   :  { %v143_v25 = vrot.slane %v142_v24, 4 }
  0xee   :  { %v144_v27 = vadd.f32 %v143_v25, %v142_v24 }
  0xf0   :  { %v145_v28 = vrot.slane %v144_v27, 2 }
  0xf2   :  { %v146_v30 = vadd.f32 %v145_v28, %v144_v27 }
  0xf4   :  { %v147_v32 = vrot.slane %v146_v30, 1 }
  0xf6   :  { %v148_v34 = vadd.f32 %v147_v32, %v146_v30 }
  0xf8   :  { %v159_v35 = vadd.f32 %v158_v33, %v148_v34 }
  0xfa   :  { %v160_v36 = vmul.f32 0.5, %v159_v35 }
  0xfc   :  { %198 = vtanh.f32 %v160_v36 }
 0x106   :  { %v199_v37 = vpop.eup %198 }
 0x107   :  { %v162_v38 = vadd.f32 1.0, %v199_v37 }
 0x109   :  { %v163_v39 = vmul.f32 0.5, %v162_v38 }
 0x10b   :  { %164 = vst [vmem:[#allocation3] sm:$0x1] %v163_v39 }
 0x10c   :  { %211 = shalt.err (!%p208_p4)
}
 0x10d   :  { %s212_s10 = scalar_lea.hbm %s297_s5, 16 }
 0x10e   :  { %p213_p5 = scmp.ne.s32.totalorder %s297_s5, %s212_s10  ;;  %p216_p6 = scmp.lt.u32.totalorder %s212_s10, %s297_s5 }
 0x110   :  { %p218_p7 = pnand %p216_p6, %p213_p5 }
 0x112   :  { %221 = shalt.err (!%p218_p7)
}
 0x113   :  { %174 = dma.vmem_to_hbm [thread:$0]  %s172_s3, 16, %s297_s5, [#allocation4]  }
 0x114   :  { %222 = dma.done.wait [#allocation4], 16  }
 0x115   :  { %223 = vsyncadd [#allocation4], 4294967280 }
 0x116   :  { %178 = vsyncpa [#allocation4], 1 }

</bundles_post_ra>
